<compile_context>
chip_gen: v7x
topology: tpu7x:2x2x1
jax: 0.10.0
libtpu: 0.0.40
codegen_flags: <defaults>
</compile_context>

<pallas_src>
import functools

import jax
import jax.numpy as jnp
from jax import lax
from jax.experimental import pallas as pl
from jax.experimental.pallas import tpu as pltpu

LANE = 128
MAX_TILE_ROWS = 2048   # (2048, 128) f32 block = 1 MiB per input; 4 MiB total
                       # with double-buffered inputs -> fits every chip's
                       # default scoped-VMEM limit (16/32 MiB).
ROW_ALIGN = 32         # sublane multiple safe for f32 / bf16 / 8-bit packing
NUM_SPLITS = 2         # v7x has 2 TensorCores; negligible cost elsewhere


def _round_up(x, m):
    return ((x + m - 1) // m) * m


def _l1_kernel(x_ref, y_ref, partial_ref, *, tile_rows, valid_rows,
               tiles_per_split):
    """Accumulate per-split, vreg-shaped partial sums of |x - y|."""
    c = pl.program_id(0)   # split ("parallel") axis
    i = pl.program_id(1)   # reduction ("arbitrary") axis

    @pl.when(i == 0)
    def _():
        partial_ref[...] = jnp.zeros_like(partial_ref)

    x = x_ref[...].astype(jnp.float32)
    y = y_ref[...].astype(jnp.float32)
    diff = jnp.abs(x - y)

    # Mask rows that fall past the real array (partial / clamped tiles).
    row0 = (c * tiles_per_split + i) * tile_rows
    row_ids = row0 + lax.broadcasted_iota(jnp.int32, diff.shape, 0)
    diff = jnp.where(row_ids < valid_rows, diff, 0.0)

    # (tile_rows, 128) -> (8, 128): elementwise VPU adds across vregs, then
    # accumulate into the per-split output block (stays vreg-shaped; no
    # per-step cross-lane reduction or SMEM round-trip).
    partial_ref[...] += jnp.sum(diff.reshape(-1, 8, LANE), axis=0)


def l1_loss(x, y):
    """Equivalent of nn.L1Loss()(x, y); torch.mean of the scalar is a no-op."""
    assert x.shape == y.shape, "L1Loss expects matching shapes"
    n = x.size

    xf = x.reshape(-1)   # keep native dtype; reshape of contiguous is free
    yf = y.reshape(-1)

    rem = n % LANE
    if rem:
        # Only materializes a copy when numel isn't a multiple of 128; padded
        # zeros contribute |0 - 0| = 0 and the divisor stays the true n.
        pad = LANE - rem
        xf = jnp.pad(xf, (0, pad))
        yf = jnp.pad(yf, (0, pad))

    rows = xf.shape[0] // LANE
    xa = xf.reshape(rows, LANE)
    ya = yf.reshape(rows, LANE)

    tile_rows = min(MAX_TILE_ROWS, _round_up(rows, ROW_ALIGN))
    total_tiles = pl.cdiv(rows, tile_rows)
    num_splits = min(NUM_SPLITS, total_tiles)
    tiles_per_split = pl.cdiv(total_tiles, num_splits)

    def in_map(c, i):
        # Clamp so we never request a block wholly past the array; any rows a
        # clamped/duplicated tile brings in are zeroed by the in-kernel mask.
        return (jnp.minimum(c * tiles_per_split + i, total_tiles - 1), 0)

    kernel = functools.partial(
        _l1_kernel,
        tile_rows=tile_rows,
        valid_rows=rows,
        tiles_per_split=tiles_per_split,
    )

    partials = pl.pallas_call(
        kernel,
        out_shape=jax.ShapeDtypeStruct((num_splits * 8, LANE), jnp.float32),
        grid_spec=pltpu.PrefetchScalarGridSpec(
            num_scalar_prefetch=0,
            grid=(num_splits, tiles_per_split),
            in_specs=[
                pl.BlockSpec((tile_rows, LANE), in_map),
                pl.BlockSpec((tile_rows, LANE), in_map),
            ],
            out_specs=pl.BlockSpec((8, LANE), lambda c, i: (c, 0)),
        ),
        compiler_params=pltpu.CompilerParams(
            dimension_semantics=("parallel", "arbitrary"),
        ),
    )(xa, ya)

    # Tiny final reduction (<= NUM_SPLITS * 1024 floats) and the mean divisor.
    return jnp.sum(partials) / jnp.float32(n)


if __name__ == "__main__":
    key = jax.random.PRNGKey(0)
    k1, k2, k3, k4 = jax.random.split(key, 4)

    # Primary case: NCHW inputs like the PyTorch module, small shapes.
    x = jax.random.normal(k1, (2, 4, 16, 16), dtype=jnp.float32)
    recon = jax.random.normal(k2, (2, 4, 16, 16), dtype=jnp.float32)
    loss = jax.block_until_ready(l1_loss(x, recon))
    ref = jnp.mean(jnp.abs(x - recon))
    assert jnp.allclose(loss, ref, rtol=1e-6, atol=1e-6), (loss, ref)

    # Ragged case (numel not a multiple of the tile) exercises the in-kernel mask.
    xb = jax.random.normal(k3, (2, 3, 7, 5), dtype=jnp.float32)
    rb = jax.random.normal(k4, (2, 3, 7, 5), dtype=jnp.float32)
    loss_b = jax.block_until_ready(l1_loss(xb, rb))
    ref_b = jnp.mean(jnp.abs(xb - rb))
    assert jnp.allclose(loss_b, ref_b, rtol=1e-6, atol=1e-6), (loss_b, ref_b)

    # bf16 inputs stay bf16 in HBM; the cast happens inside the kernel.
    xc = x.astype(jnp.bfloat16)
    rc = recon.astype(jnp.bfloat16)
    loss_c = jax.block_until_ready(l1_loss(xc, rc))
    ref_c = jnp.mean(jnp.abs(xc.astype(jnp.float32) - rc.astype(jnp.float32)))
    assert jnp.allclose(loss_c, ref_c, rtol=1e-5, atol=1e-5), (loss_c, ref_c)

    print("KERNEL_OK")
</pallas_src>

<mosaic_0001>
module attributes {stable_mosaic.version = 11 : i64} {
  func.func @_l1_kernel(%arg0: i32, %arg1: i32, %arg2: memref<32x128xf32, #tpu.memory_space<vmem>>, %arg3: memref<32x128xf32, #tpu.memory_space<vmem>>, %arg4: memref<8x128xf32, #tpu.memory_space<vmem>>) attributes {dimension_semantics = [#tpu.dimension_semantics<parallel>, #tpu.dimension_semantics<arbitrary>], iteration_bounds = array<i64: 1, 1>, scalar_prefetch = 0 : i64, scratch_operands = 0 : i64, tpu.core_type = #tpu.core_type<tc>, window_params = [{transform_indices = @transform_0, window_bounds = array<i64: 32, 128>}, {transform_indices = @transform_1, window_bounds = array<i64: 32, 128>}, {transform_indices = @transform_2, window_bounds = array<i64: 8, 128>}]} {
    %c0_i32 = arith.constant 0 : i32
    %0 = arith.cmpi eq, %arg1, %c0_i32 : i32
    %1 = arith.extui %0 : i1 to i32
    %c0_i32_0 = arith.constant 0 : i32
    %2 = arith.cmpi ne, %1, %c0_i32_0 : i32
    scf.if %2 {
      %cst_9 = arith.constant 0.000000e+00 : f32
      %22 = vector.broadcast %cst_9 : f32 to vector<8x128xf32>
      %c0_10 = arith.constant 0 : index
      %c0_11 = arith.constant 0 : index
      %23 = vector.load %arg4[%c0_10, %c0_11] : memref<8x128xf32, #tpu.memory_space<vmem>>, vector<8x128xf32>
      tpu.vector_store %arg4[%c0_10, %c0_11], %22 {strides = array<i32>} : memref<8x128xf32, #tpu.memory_space<vmem>>, vector<8x128xf32>,
    } else {
    }
    %c0 = arith.constant 0 : index
    %c0_1 = arith.constant 0 : index
    %3 = vector.load %arg2[%c0, %c0_1] : memref<32x128xf32, #tpu.memory_space<vmem>>, vector<32x128xf32>
    %c0_2 = arith.constant 0 : index
    %c0_3 = arith.constant 0 : index
    %4 = vector.load %arg3[%c0_2, %c0_3] : memref<32x128xf32, #tpu.memory_space<vmem>>, vector<32x128xf32>
    %5 = arith.subf %3, %4 : vector<32x128xf32>
    %6 = math.absf %5 : vector<32x128xf32>
    %c1_i32 = arith.constant 1 : i32
    %7 = arith.muli %arg0, %c1_i32 : i32
    %8 = arith.addi %7, %arg1 : i32
    %c32_i32 = arith.constant 32 : i32
    %9 = arith.muli %8, %c32_i32 : i32
    %10 = tpu.iota {dimensions = array<i32: 0>} : vector<32x128xi32>
    %11 = vector.broadcast %9 : i32 to vector<32x128xi32>
    %12 = arith.addi %11, %10 : vector<32x128xi32>
    %c16_i32 = arith.constant 16 : i32
    %13 = vector.broadcast %c16_i32 : i32 to vector<32x128xi32>
    %14 = arith.cmpi slt, %12, %13 : vector<32x128xi32>
    %cst = arith.constant 0.000000e+00 : f32
    %15 = vector.broadcast %cst : f32 to vector<32x128xf32>
    %16 = arith.select %14, %6, %15 : vector<32x128xi1>, vector<32x128xf32>
    %c0_4 = arith.constant 0 : index
    %c0_5 = arith.constant 0 : index
    %17 = vector.load %arg4[%c0_4, %c0_5] : memref<8x128xf32, #tpu.memory_space<vmem>>, vector<8x128xf32>
    %18 = vector.shape_cast %16 : vector<32x128xf32> to vector<4x8x128xf32>
    %cst_6 = arith.constant dense<0.000000e+00> : vector<8x128xf32>
    %19 = vector.multi_reduction <add>, %18, %cst_6 [0] : vector<4x8x128xf32> to vector<8x128xf32>
    %20 = arith.addf %17, %19 : vector<8x128xf32>
    %c0_7 = arith.constant 0 : index
    %c0_8 = arith.constant 0 : index
    %21 = vector.load %arg4[%c0_7, %c0_8] : memref<8x128xf32, #tpu.memory_space<vmem>>, vector<8x128xf32>
    tpu.vector_store %arg4[%c0_7, %c0_8], %20 {strides = array<i32>} : memref<8x128xf32, #tpu.memory_space<vmem>>, vector<8x128xf32>,
    return
  }
  func.func @transform_0(%arg0: i32, %arg1: i32) -> (i32, i32) {
    %c1_i32 = arith.constant 1 : i32
    %0 = arith.muli %arg0, %c1_i32 : i32
    %1 = arith.addi %0, %arg1 : i32
    %c0_i32 = arith.constant 0 : i32
    %2 = arith.minsi %1, %c0_i32 : i32
    %c0_i32_0 = arith.constant 0 : i32
    %c0_i32_1 = arith.constant 0 : i32
    return %2, %c0_i32_0 : i32, i32
  }
  func.func @transform_1(%arg0: i32, %arg1: i32) -> (i32, i32) {
    %c1_i32 = arith.constant 1 : i32
    %0 = arith.muli %arg0, %c1_i32 : i32
    %1 = arith.addi %0, %arg1 : i32
    %c0_i32 = arith.constant 0 : i32
    %2 = arith.minsi %1, %c0_i32 : i32
    %c0_i32_0 = arith.constant 0 : i32
    %c0_i32_1 = arith.constant 0 : i32
    return %2, %c0_i32_0 : i32, i32
  }
  func.func @transform_2(%arg0: i32, %arg1: i32) -> (i32, i32) {
    %c0_i32 = arith.constant 0 : i32
    %c0_i32_0 = arith.constant 0 : i32
    return %arg0, %c0_i32 : i32, i32
  }
}

</mosaic_0001>

<bundles_post_ra>
// kernel: tpu_custom_call.1
= control target key start
LH: loop header
LB: loop body
LE: loop exit
PB: predicated region body
PF: predicated region fallthrough
CT: control target
= control target key end

     0   :  { %7 = vsyncpa [#allocation3], 0  ;;  %s273_s0 = inlined_call_operand.hbm [shape: f32[16,128], index: 0, kind: input, shape index: {}]   ;;  %s274_s1 = inlined_call_operand.hbm [shape: f32[16,128], index: 1, kind: input, shape index: {}]   ;;  %s275_s2 = inlined_call_operand.hbm [shape: f32[8,128], index: 2, kind: output, shape index: {}]  }
   0x1   :  { %8 = vsyncpa [#allocation6], 0 }
   0x2   :  { %9 = vsyncpa [#allocation4], 0 }
   0x3   :  { %20 = vsyncadd [#allocation3], 256  ;;  %s217_s9 = smov [#allocation2]   ;;  %s145_s13 = scalar_lea.hbm %s273_s0, 256 }
   0x4   :  { %s25_s10 = sshll.u32 %s217_s9, 4  ;;  %p146_p0 = scmp.ne.s32.totalorder %s273_s0, %s145_s13  ;;  %s26_s10 = int_to_ptr.vmem [resolvable:$true] %s25_s10 }
   0x5   :  { %p149_p1 = scmp.lt.u32.totalorder %s145_s13, %s273_s0 }
   0x7   :  { %p151_p2 = pnand %p149_p1, %p146_p0 }
   0x9   :  { %154 = shalt.err (!%p151_p2)
}
   0xa   :  { %s155_s18 = scalar_lea.vmem %s26_s10, 256  ;;  %s159_s19 = scalar_lea.vmem %s26_s10, 512 }
   0xb   :  { %p156_p3 = scmp.ne.s32.totalorder %s26_s10, %s155_s18  ;;  %p160_p4 = scmp.lt.s32.totalorder %s26_s10, %s26_s10 }
   0xc   :  { %p161_p5 = scmp.lt.s32.totalorder %s159_s19, %s155_s18 }
   0xe   :  { %p162_p6 = por %p161_p5, %p160_p4 }
  0x10   :  { %p163_p7 = pnand %p162_p6, %p156_p3 }
  0x12   :  { %166 = shalt.err (!%p163_p7)
}
  0x13   :  { %s218_s20 = smov 128   ;;  %s219_s21 = smov 8  }
  0x14   :  { %31 = dma.hbm_to_vmem [thread:$0]  %s273_s0, 256, %s26_s10, [#allocation3], %s218_s20, %s218_s20, %s219_s21  }
  0x15   :  { %42 = vsyncadd [#allocation6], 256  ;;  %s220_s24 = smov [#allocation5]   ;;  %s167_s28 = scalar_lea.hbm %s274_s1, 256 }
  0x16   :  { %s47_s25 = sshll.u32 %s220_s24, 4  ;;  %p168_p8 = scmp.ne.s32.totalorder %s274_s1, %s167_s28  ;;  %s48_s25 = int_to_ptr.vmem [resolvable:$true] %s47_s25 }
  0x17   :  { %p171_p9 = scmp.lt.u32.totalorder %s167_s28, %s274_s1 }
  0x19   :  { %p173_p10 = pnand %p171_p9, %p168_p8 }
  0x1b   :  { %176 = shalt.err (!%p173_p10)
}
  0x1c   :  { %s177_s5 = scalar_lea.vmem %s48_s25, 256  ;;  %s181_s0 = scalar_lea.vmem %s48_s25, 512 }
  0x1d   :  { %p178_p11 = scmp.ne.s32.totalorder %s48_s25, %s177_s5  ;;  %p182_p12 = scmp.lt.s32.totalorder %s48_s25, %s48_s25 }
  0x1e   :  { %p183_p13 = scmp.lt.s32.totalorder %s181_s0, %s177_s5 }
  0x20   :  { %p184_p0 = por %p183_p13, %p182_p12 }
  0x22   :  { %p185_p1 = pnand %p184_p0, %p178_p11 }
  0x24   :  { %188 = shalt.err (!%p185_p1)
}
  0x25   :  { %53 = dma.hbm_to_vmem [thread:$0]  %s274_s1, 256, %s48_s25, [#allocation6], %s218_s20, %s218_s20, %s219_s21  }
  0x26   :  { %211 = dma.done.wait [#allocation3], 512  }
  0x27   :  { %212 = vsyncadd [#allocation3], 4294966784 }
  0x28   :  { %213 = dma.done.wait [#allocation6], 512  }
  0x29   :  { %214 = vsyncadd [#allocation6], 4294966784  ;;  %v77_v0 = vld [vmem:[#allocation2] sm:$0xff]  ;;  %v78_v1 = vld [vmem:[#allocation2 + $0x8] sm:$0xff]  ;;  %s221_s8 = smov [#allocation7]  }
  0x2a   :  { %v81_v2 = vld [vmem:[#allocation5] sm:$0xff]  ;;  %v82_v3 = vld [vmem:[#allocation5 + $0x8] sm:$0xff]  ;;  %s125_s9 = sshll.u32 %s221_s8, 4  ;;  %s126_s9 = int_to_ptr.vmem [resolvable:$true] %s125_s9 }
  0x2b   :  { %v85_v4 = vsub.f32 %v77_v0, %v81_v2  ;;  %v86_v5 = vsub.f32 %v78_v1, %v82_v3  ;;  %s189_s10 = scalar_lea.vmem %s126_s9, 128  ;;  %p194_p3 = scmp.lt.s32.totalorder %s126_s9, %s126_s9 }
  0x2c   :  { %p190_p2 = scmp.ne.s32.totalorder %s126_s9, %s189_s10  ;;  %p195_p4 = scmp.lt.s32.totalorder %s189_s10, %s189_s10 }
  0x2d   :  { %v89_v6 = vand.u32 2147483647, %v85_v4  ;;  %v90_v7 = vand.u32 2147483647, %v86_v5 }
  0x2e   :  { %p196_p5 = por %p195_p4, %p194_p3 }
  0x2f   :  { %v114_v8 = vadd.f32 %v90_v7, %v89_v6 }
  0x30   :  { %p197_p6 = pnand %p196_p5, %p190_p2 }
  0x31   :  { %118 = vst [vmem:[#allocation7] sm:$0xff] %v114_v8 }
  0x32   :  { %200 = shalt.err (!%p197_p6)
}
  0x33   :  { %s201_s12 = scalar_lea.hbm %s275_s2, 128 }
  0x34   :  { %p202_p7 = scmp.ne.s32.totalorder %s275_s2, %s201_s12  ;;  %p205_p8 = scmp.lt.u32.totalorder %s201_s12, %s275_s2 }
  0x36   :  { %p207_p9 = pnand %p205_p8, %p202_p7 }
  0x38   :  { %210 = shalt.err (!%p207_p9)
}
  0x39   :  { %128 = dma.vmem_to_hbm [thread:$0]  %s126_s9, 128, %s275_s2, [#allocation4]  }
  0x3a   :  { %215 = dma.done.wait [#allocation4], 128  }
  0x3b   :  { %216 = vsyncadd [#allocation4], 4294967168 }
  0x3c   :  { %132 = vsyncpa [#allocation3], 1 }
  0x3d   :  { %133 = vsyncpa [#allocation6], 1 }
  0x3e   :  { %134 = vsyncpa [#allocation4], 1 }

</bundles_post_ra>
